<compile_context>
chip_gen: v7x
topology: tpu7x:2x2x1
jax: 0.10.0
libtpu: 0.0.40
codegen_flags: <defaults>
</compile_context>

<pallas_src>
import jax
import jax.numpy as jnp
from jax.experimental import pallas as pl
from jax.experimental.pallas import tpu as pltpu

IN_CH = 1
HID_CH = 3
OUT_CH = 3
WINDOW = 15
KSIZE = 3
F = WINDOW * HID_CH              # 45  = per-branch feature rows
N_BRANCH = 3
NF = N_BRANCH * F                # 135 = stacked feature rows (all branches)
NF_AL = ((NF + 7) // 8) * 8      # 136 = 8-aligned offset of the 2nd stacked block
X_COLS = N_BRANCH * WINDOW       # 45  = packed input width (brake|steer|throttle)
MLP_OUT = 2
OUT_ROWS = 8                     # output rows padded to 8 sublanes (unmasked store)


# ----------------------------- Pallas kernel --------------------------------
def _pksnet_kernel(x_ref, a1_ref, b1_ref, a2w1a_ref, b2_ref,
                   w1b_ref, b1d_ref, wf_ref, bf_ref, out_ref):
    # (tb, 45) input tile -> (45, tb): batch on the lane axis; cast to bf16 at
    # the MXU boundary only (elementwise math stays f32).
    x = x_ref[...].T.astype(jnp.bfloat16)                          # (45, tb)

    # conv1 (3 branches x 3 channels, Toeplitz) + bias + ReLU
    h1 = jnp.dot(a1_ref[...], x, preferred_element_type=jnp.float32)
    h1 = jnp.maximum(h1 + b1_ref[...], 0.0)                        # (135, tb) f32

    # One MXU pass for both consumers of H1:
    #   rows 0:135   -> conv2 (+ folded residual identity)
    #   rows 136:271 -> decoder-stage-1 h1-part
    fused = jnp.dot(a2w1a_ref[...], h1.astype(jnp.bfloat16),
                    preferred_element_type=jnp.float32)            # (271, tb)
    h2 = jnp.maximum(fused[:NF, :] + b2_ref[...], 0.0)             # (135, tb)

    # decoder stage 1: h1-part + W1b @ H2 + bias, ReLU
    d1 = fused[NF_AL:, :] + jnp.dot(w1b_ref[...], h2.astype(jnp.bfloat16),
                                    preferred_element_type=jnp.float32)
    d1 = jnp.maximum(d1 + b1d_ref[...], 0.0)                       # (135, tb)

    # decoder stage 2 + branch sum + MLP folded into one (8, 135) matmul;
    # rows 2..7 are zero padding for an unmasked 8-sublane, lane-dense store.
    out_ref[...] = (jnp.dot(wf_ref[...], d1.astype(jnp.bfloat16),
                            preferred_element_type=jnp.float32)
                    + bf_ref[...])                                 # (8, tb)


# ------------------------------ glue (JAX) -----------------------------------
def conv1d_same_toeplitz(taps, L):
    """(L, L) matrix T so that (x @ T)[t] == sum_k taps[k] * x_pad[t + k]."""
    s = jnp.arange(L)[:, None]
    t = jnp.arange(L)[None, :]
    d = s - t
    T = jnp.zeros((L, L), jnp.float32)
    for k in range(KSIZE):
        T = T + jnp.where(d == (k - 1), taps[k], 0.0)
    return T


def init_params(key):
    keys = iter(jax.random.split(key, 32))

    def nrm(shape, scale=0.2):
        return scale * jax.random.normal(next(keys), shape, dtype=jnp.float32)

    enc = [(nrm((HID_CH, IN_CH, KSIZE)), nrm((HID_CH,)),
            nrm((HID_CH, HID_CH, KSIZE)), nrm((HID_CH,)))
           for _ in range(N_BRANCH)]
    dec = [(nrm((F, 2 * F)), nrm((F,)),
            nrm((OUT_CH, F)), nrm((OUT_CH,)))
           for _ in range(N_BRANCH)]
    mlp = (nrm((MLP_OUT, OUT_CH)), nrm((MLP_OUT,)))
    return {"enc": enc, "dec": dec, "mlp": mlp}


def pack_params(params):
    """Host-side packing of all weights into fused matrices (bf16) + f32 biases."""
    A1 = jnp.zeros((NF, X_COLS), jnp.float32)
    B1 = jnp.zeros((NF, 1), jnp.float32)
    A2 = jnp.zeros((NF, NF), jnp.float32)
    B2 = jnp.zeros((NF, 1), jnp.float32)
    W1a = jnp.zeros((NF, NF), jnp.float32)
    W1b = jnp.zeros((NF, NF), jnp.float32)
    B1d = jnp.zeros((NF, 1), jnp.float32)
    W2p = jnp.zeros((OUT_CH, NF), jnp.float32)
    b2sum = jnp.zeros((OUT_CH,), jnp.float32)

    for i in range(N_BRANCH):
        w1, b1, w2, b2 = params["enc"][i]
        # conv1: output row block (branch i, ch c) reads input cols [15*i : 15*i+15]
        for c in range(HID_CH):
            T = conv1d_same_toeplitz(w1[c, 0], WINDOW)             # (15, 15)
            r0 = F * i + WINDOW * c
            A1 = A1.at[r0:r0 + WINDOW, WINDOW * i:WINDOW * (i + 1)].set(T.T)
            B1 = B1.at[r0:r0 + WINDOW, 0].set(b1[c])
        # conv2: dense over channels within a branch (block-diag over branches)
        for co in range(HID_CH):
            r0 = F * i + WINDOW * co
            for ci in range(HID_CH):
                T = conv1d_same_toeplitz(w2[co, ci], WINDOW)
                c0 = F * i + WINDOW * ci
                A2 = A2.at[r0:r0 + WINDOW, c0:c0 + WINDOW].set(T.T)
            B2 = B2.at[r0:r0 + WINDOW, 0].set(b2[co])
        # decoder stage 1: Linear(90 -> 45) per branch; split h1-part / h2-part
        W1, bd1, W2, bd2 = params["dec"][i]
        W1a = W1a.at[F * i:F * (i + 1), F * i:F * (i + 1)].set(W1[:, :F])
        W1b = W1b.at[F * i:F * (i + 1), F * i:F * (i + 1)].set(W1[:, F:])
        B1d = B1d.at[F * i:F * (i + 1), 0].set(bd1)
        # decoder stage 2: Linear(45, 3); branch sum folds into column packing
        W2p = W2p.at[:, F * i:F * (i + 1)].set(W2)
        b2sum = b2sum + bd2

    A2 = A2 + jnp.eye(NF, dtype=jnp.float32)          # fold residual h2 += h1

    # Stack the two matmuls that share H1 as RHS: [A2 ; zero spacer ; W1a].
    spacer = jnp.zeros((NF_AL - NF, NF), jnp.float32)
    A2W1A = jnp.concatenate([A2, spacer, W1a], axis=0)             # (271, 135)

    Wm, bm = params["mlp"]
    Wf = Wm @ W2p                                                  # (2, 135)
    Bf = Wm @ b2sum + bm                                           # (2,)
    # Pad to 8 output rows for an unmasked (8, tb) store.
    Wf = jnp.concatenate(
        [Wf, jnp.zeros((OUT_ROWS - MLP_OUT, NF), jnp.float32)], axis=0)
    Bf = jnp.concatenate(
        [Bf, jnp.zeros((OUT_ROWS - MLP_OUT,), jnp.float32)]).reshape(OUT_ROWS, 1)

    # bf16 dot operands; biases stay f32 (elementwise path stays f32).
    return dict(a1=A1.astype(jnp.bfloat16), b1=B1,
                a2w1a=A2W1A.astype(jnp.bfloat16), b2=B2,
                w1b=W1b.astype(jnp.bfloat16), b1d=B1d,
                wf=Wf.astype(jnp.bfloat16), bf=Bf)


def _round_up(x, m):
    return ((x + m - 1) // m) * m


def _choose_tile(B, tile_b):
    """Batch tile: multiple of 128 lanes, amortizes grid-step overhead, and
    gives >= 2 balanced grid steps when B is large (v7x has 2 TensorCores)."""
    tb = min(tile_b, _round_up(B, 128))
    if B > 128 and _round_up(B, tb) // tb < 2:
        tb = max(128, _round_up((B + 1) // 2, 128))
    return tb


def pksnet_forward(brake, steer, throttle, packed, *, tile_b=1024):
    """brake / steer / throttle: (B, 1, WINDOW) float32 (NCW, like torch Conv1d)."""
    B = brake.shape[0]
    # Single contiguous (B, 45) slab, batch on rows — no host-side transpose;
    # each tile is transposed in-kernel so the batch lands on the lane axis.
    x = jnp.concatenate([brake[:, 0, :], steer[:, 0, :], throttle[:, 0, :]],
                        axis=1).astype(jnp.float32)                # (B, 45)
    tb = _choose_tile(B, tile_b)
    b_pad = _round_up(B, tb)
    if b_pad != B:
        x = jnp.pad(x, ((0, b_pad - B), (0, 0)))
    grid = (b_pad // tb,)

    def const_spec(arr):
        nd = arr.ndim
        return pl.BlockSpec(arr.shape, lambda i, _nd=nd: (0,) * _nd)

    order = ("a1", "b1", "a2w1a", "b2", "w1b", "b1d", "wf", "bf")
    weights = [packed[k] for k in order]

    out = pl.pallas_call(
        _pksnet_kernel,
        out_shape=jax.ShapeDtypeStruct((OUT_ROWS, b_pad), jnp.float32),
        grid=grid,
        in_specs=[pl.BlockSpec((tb, X_COLS), lambda i: (i, 0))]
                 + [const_spec(w) for w in weights],
        out_specs=pl.BlockSpec((OUT_ROWS, tb), lambda i: (0, i)),
        compiler_params=pltpu.CompilerParams(
            dimension_semantics=("parallel",)),
    )(x, *weights)
    return out[:MLP_OUT, :B].T                                     # (B, 2)


# --------------------------- pure-JAX reference -------------------------------
def reference_forward(brake, steer, throttle, params):
    def encoder(x, w1, b1, w2, b2):
        B, _, L = x.shape
        xs = x[:, 0, :]
        xp = jnp.pad(xs, ((0, 0), (1, 1)))
        h1 = jnp.stack(
            [sum(w1[c, 0, k] * xp[:, k:k + L] for k in range(KSIZE)) + b1[c]
             for c in range(HID_CH)], axis=1)
        h1 = jax.nn.relu(h1)
        h1p = jnp.pad(h1, ((0, 0), (0, 0), (1, 1)))
        h2 = jnp.stack(
            [sum(w2[co, ci, k] * h1p[:, ci, k:k + L]
                 for ci in range(HID_CH) for k in range(KSIZE)) + b2[co]
             for co in range(HID_CH)], axis=1)
        h2 = jax.nn.relu(h2 + h1)
        return jnp.concatenate([h1, h2], axis=1).reshape(B, -1)

    def decoder(f, W1, b1, W2, b2):
        return jax.nn.relu(f @ W1.T + b1) @ W2.T + b2

    feats = [encoder(x, *params["enc"][i])
             for i, x in enumerate((brake, steer, throttle))]
    out = sum(decoder(feats[i], *params["dec"][i]) for i in range(N_BRANCH))
    Wm, bm = params["mlp"]
    return out @ Wm.T + bm


if __name__ == "__main__":
    key = jax.random.PRNGKey(0)
    kp, kb, ks, kt = jax.random.split(key, 4)
    params = init_params(kp)

    B = 2
    brake = jax.random.normal(kb, (B, IN_CH, WINDOW), dtype=jnp.float32)
    steer = jax.random.normal(ks, (B, IN_CH, WINDOW), dtype=jnp.float32)
    throttle = jax.random.normal(kt, (B, IN_CH, WINDOW), dtype=jnp.float32)

    packed = pack_params(params)
    out = pksnet_forward(brake, steer, throttle, packed)
    out = jax.block_until_ready(out)

    ref = reference_forward(brake, steer, throttle, params)
    assert out.shape == (B, MLP_OUT)
    if not jnp.allclose(out, ref, rtol=2e-2, atol=2e-2):
        raise AssertionError(f"kernel/reference mismatch:\n{out}\nvs\n{ref}")
    print("KERNEL_OK")
</pallas_src>

<mosaic_0001>
module attributes {stable_mosaic.version = 11 : i64} {
  func.func @_pksnet_kernel(%arg0: i32, %arg1: memref<128x45xf32, #tpu.memory_space<vmem>>, %arg2: memref<135x45xbf16, #tpu.memory_space<vmem>>, %arg3: memref<135x1xf32, #tpu.memory_space<vmem>>, %arg4: memref<271x135xbf16, #tpu.memory_space<vmem>>, %arg5: memref<135x1xf32, #tpu.memory_space<vmem>>, %arg6: memref<135x135xbf16, #tpu.memory_space<vmem>>, %arg7: memref<135x1xf32, #tpu.memory_space<vmem>>, %arg8: memref<8x135xbf16, #tpu.memory_space<vmem>>, %arg9: memref<8x1xf32, #tpu.memory_space<vmem>>, %arg10: memref<8x128xf32, #tpu.memory_space<vmem>>) attributes {dimension_semantics = [#tpu.dimension_semantics<parallel>], iteration_bounds = array<i64: 1>, scalar_prefetch = 0 : i64, scratch_operands = 0 : i64, tpu.core_type = #tpu.core_type<tc>, window_params = [{transform_indices = @transform_0, window_bounds = array<i64: 128, 45>}, {pipeline_mode = #tpu.pipeline_mode<synchronous>, transform_indices = @transform_1, window_bounds = array<i64: 135, 45>}, {pipeline_mode = #tpu.pipeline_mode<synchronous>, transform_indices = @transform_2, window_bounds = array<i64: 135, 1>}, {pipeline_mode = #tpu.pipeline_mode<synchronous>, transform_indices = @transform_3, window_bounds = array<i64: 271, 135>}, {pipeline_mode = #tpu.pipeline_mode<synchronous>, transform_indices = @transform_4, window_bounds = array<i64: 135, 1>}, {pipeline_mode = #tpu.pipeline_mode<synchronous>, transform_indices = @transform_5, window_bounds = array<i64: 135, 135>}, {pipeline_mode = #tpu.pipeline_mode<synchronous>, transform_indices = @transform_6, window_bounds = array<i64: 135, 1>}, {pipeline_mode = #tpu.pipeline_mode<synchronous>, transform_indices = @transform_7, window_bounds = array<i64: 8, 135>}, {pipeline_mode = #tpu.pipeline_mode<synchronous>, transform_indices = @transform_8, window_bounds = array<i64: 8, 1>}, {transform_indices = @transform_9, window_bounds = array<i64: 8, 128>}]} {
    %c0 = arith.constant 0 : index
    %c0_0 = arith.constant 0 : index
    %0 = vector.load %arg1[%c0, %c0_0] : memref<128x45xf32, #tpu.memory_space<vmem>>, vector<128x45xf32>
    %1 = tpu.transpose %0, [1, 0] : vector<128x45xf32> -> vector<45x128xf32>
    %2 = arith.truncf %1 : vector<45x128xf32> to vector<45x128xbf16>
    %c0_1 = arith.constant 0 : index
    %c0_2 = arith.constant 0 : index
    %3 = vector.load %arg2[%c0_1, %c0_2] : memref<135x45xbf16, #tpu.memory_space<vmem>>, vector<135x45xbf16>
    %cst = arith.constant dense<0.000000e+00> : vector<135x128xf32>
    %4 = tpu.matmul %3, %2, %cst {dimension_numbers = #tpu.dot_dimension_numbers<[1], [0], [0], [1], [0, 0, 1, 1], [], []>} : vector<135x45xbf16>, vector<45x128xbf16>, vector<135x128xf32> -> vector<135x128xf32>
    %c0_3 = arith.constant 0 : index
    %c0_4 = arith.constant 0 : index
    %5 = vector.load %arg3[%c0_3, %c0_4] : memref<135x1xf32, #tpu.memory_space<vmem>>, vector<135x1xf32>
    %6 = vector.broadcast %5 : vector<135x1xf32> to vector<135x128xf32>
    %7 = arith.addf %4, %6 : vector<135x128xf32>
    %cst_5 = arith.constant 0.000000e+00 : f32
    %8 = vector.broadcast %cst_5 : f32 to vector<135x128xf32>
    %9 = arith.maximumf %7, %8 : vector<135x128xf32>
    %c0_6 = arith.constant 0 : index
    %c0_7 = arith.constant 0 : index
    %10 = vector.load %arg4[%c0_6, %c0_7] : memref<271x135xbf16, #tpu.memory_space<vmem>>, vector<271x135xbf16>
    %11 = arith.truncf %9 : vector<135x128xf32> to vector<135x128xbf16>
    %cst_8 = arith.constant dense<0.000000e+00> : vector<271x128xf32>
    %12 = tpu.matmul %10, %11, %cst_8 {dimension_numbers = #tpu.dot_dimension_numbers<[1], [0], [0], [1], [0, 0, 1, 1], [], []>} : vector<271x135xbf16>, vector<135x128xbf16>, vector<271x128xf32> -> vector<271x128xf32>
    %13 = vector.extract_strided_slice %12 {offsets = [0, 0], sizes = [135, 128], strides = [1, 1]} : vector<271x128xf32> to vector<135x128xf32>
    %c0_9 = arith.constant 0 : index
    %c0_10 = arith.constant 0 : index
    %14 = vector.load %arg5[%c0_9, %c0_10] : memref<135x1xf32, #tpu.memory_space<vmem>>, vector<135x1xf32>
    %15 = vector.broadcast %14 : vector<135x1xf32> to vector<135x128xf32>
    %16 = arith.addf %13, %15 : vector<135x128xf32>
    %cst_11 = arith.constant 0.000000e+00 : f32
    %17 = vector.broadcast %cst_11 : f32 to vector<135x128xf32>
    %18 = arith.maximumf %16, %17 : vector<135x128xf32>
    %19 = vector.extract_strided_slice %12 {offsets = [136, 0], sizes = [135, 128], strides = [1, 1]} : vector<271x128xf32> to vector<135x128xf32>
    %c0_12 = arith.constant 0 : index
    %c0_13 = arith.constant 0 : index
    %20 = vector.load %arg6[%c0_12, %c0_13] : memref<135x135xbf16, #tpu.memory_space<vmem>>, vector<135x135xbf16>
    %21 = arith.truncf %18 : vector<135x128xf32> to vector<135x128xbf16>
    %cst_14 = arith.constant dense<0.000000e+00> : vector<135x128xf32>
    %22 = tpu.matmul %20, %21, %cst_14 {dimension_numbers = #tpu.dot_dimension_numbers<[1], [0], [0], [1], [0, 0, 1, 1], [], []>} : vector<135x135xbf16>, vector<135x128xbf16>, vector<135x128xf32> -> vector<135x128xf32>
    %23 = arith.addf %19, %22 : vector<135x128xf32>
    %c0_15 = arith.constant 0 : index
    %c0_16 = arith.constant 0 : index
    %24 = vector.load %arg7[%c0_15, %c0_16] : memref<135x1xf32, #tpu.memory_space<vmem>>, vector<135x1xf32>
    %25 = vector.broadcast %24 : vector<135x1xf32> to vector<135x128xf32>
    %26 = arith.addf %23, %25 : vector<135x128xf32>
    %cst_17 = arith.constant 0.000000e+00 : f32
    %27 = vector.broadcast %cst_17 : f32 to vector<135x128xf32>
    %28 = arith.maximumf %26, %27 : vector<135x128xf32>
    %c0_18 = arith.constant 0 : index
    %c0_19 = arith.constant 0 : index
    %29 = vector.load %arg8[%c0_18, %c0_19] : memref<8x135xbf16, #tpu.memory_space<vmem>>, vector<8x135xbf16>
    %30 = arith.truncf %28 : vector<135x128xf32> to vector<135x128xbf16>
    %cst_20 = arith.constant dense<0.000000e+00> : vector<8x128xf32>
    %31 = tpu.matmul %29, %30, %cst_20 {dimension_numbers = #tpu.dot_dimension_numbers<[1], [0], [0], [1], [0, 0, 1, 1], [], []>} : vector<8x135xbf16>, vector<135x128xbf16>, vector<8x128xf32> -> vector<8x128xf32>
    %c0_21 = arith.constant 0 : index
    %c0_22 = arith.constant 0 : index
    %32 = vector.load %arg9[%c0_21, %c0_22] : memref<8x1xf32, #tpu.memory_space<vmem>>, vector<8x1xf32>
    %33 = vector.broadcast %32 : vector<8x1xf32> to vector<8x128xf32>
    %34 = arith.addf %31, %33 : vector<8x128xf32>
    %c0_23 = arith.constant 0 : index
    %c0_24 = arith.constant 0 : index
    %35 = vector.load %arg10[%c0_23, %c0_24] : memref<8x128xf32, #tpu.memory_space<vmem>>, vector<8x128xf32>
    tpu.vector_store %arg10[%c0_23, %c0_24], %34 {strides = array<i32>} : memref<8x128xf32, #tpu.memory_space<vmem>>, vector<8x128xf32>,
    return
  }
  func.func @transform_0(%arg0: i32) -> (i32, i32) {
    %c0_i32 = arith.constant 0 : i32
    %c0_i32_0 = arith.constant 0 : i32
    return %arg0, %c0_i32 : i32, i32
  }
  func.func @transform_1(%arg0: i32) -> (i32, i32) {
    %c0_i32 = arith.constant 0 : i32
    %c0_i32_0 = arith.constant 0 : i32
    %c0_i32_1 = arith.constant 0 : i32
    return %c0_i32, %c0_i32_0 : i32, i32
  }
  func.func @transform_2(%arg0: i32) -> (i32, i32) {
    %c0_i32 = arith.constant 0 : i32
    %c0_i32_0 = arith.constant 0 : i32
    %c0_i32_1 = arith.constant 0 : i32
    return %c0_i32, %c0_i32_0 : i32, i32
  }
  func.func @transform_3(%arg0: i32) -> (i32, i32) {
    %c0_i32 = arith.constant 0 : i32
    %c0_i32_0 = arith.constant 0 : i32
    %c0_i32_1 = arith.constant 0 : i32
    return %c0_i32, %c0_i32_0 : i32, i32
  }
  func.func @transform_4(%arg0: i32) -> (i32, i32) {
    %c0_i32 = arith.constant 0 : i32
    %c0_i32_0 = arith.constant 0 : i32
    %c0_i32_1 = arith.constant 0 : i32
    return %c0_i32, %c0_i32_0 : i32, i32
  }
  func.func @transform_5(%arg0: i32) -> (i32, i32) {
    %c0_i32 = arith.constant 0 : i32
    %c0_i32_0 = arith.constant 0 : i32
    %c0_i32_1 = arith.constant 0 : i32
    return %c0_i32, %c0_i32_0 : i32, i32
  }
  func.func @transform_6(%arg0: i32) -> (i32, i32) {
    %c0_i32 = arith.constant 0 : i32
    %c0_i32_0 = arith.constant 0 : i32
    %c0_i32_1 = arith.constant 0 : i32
    return %c0_i32, %c0_i32_0 : i32, i32
  }
  func.func @transform_7(%arg0: i32) -> (i32, i32) {
    %c0_i32 = arith.constant 0 : i32
    %c0_i32_0 = arith.constant 0 : i32
    %c0_i32_1 = arith.constant 0 : i32
    return %c0_i32, %c0_i32_0 : i32, i32
  }
  func.func @transform_8(%arg0: i32) -> (i32, i32) {
    %c0_i32 = arith.constant 0 : i32
    %c0_i32_0 = arith.constant 0 : i32
    %c0_i32_1 = arith.constant 0 : i32
    return %c0_i32, %c0_i32_0 : i32, i32
  }
  func.func @transform_9(%arg0: i32) -> (i32, i32) {
    %c0_i32 = arith.constant 0 : i32
    %c0_i32_0 = arith.constant 0 : i32
    return %c0_i32, %arg0 : i32, i32
  }
}

</mosaic_0001>

<bundles_post_ra>
// kernel: tpu_custom_call.1
= control target key start
LH: loop header
LB: loop body
LE: loop exit
PB: predicated region body
PF: predicated region fallthrough
CT: control target
= control target key end

     0   :  { %v1709_v1 = vmov 0   ;;  %v1710_v6 = vmov 0.0   ;;  %vm1711_vm0 = vmmov 0   ;;  %s2298_s0 = inlined_call_operand.vmem [shape: f32[128,45], index: 0, kind: input, shape index: {}]   ;;  %s2299_s1 = inlined_call_operand.vmem [shape: bf16[135,45], index: 1, kind: input, shape index: {}]   ;;  %s2300_s2 = inlined_call_operand.vmem [shape: f32[135,1], index: 2, kind: input, shape index: {}]   ;;  %s2301_s3 = inlined_call_operand.vmem [shape: bf16[271,135], index: 3, kind: input, shape index: {}]   ;;  %s2302_s4 = inlined_call_operand.vmem [shape: f32[135,1], index: 4, kind: input, shape index: {}]   ;;  %s2303_s5 = inlined_call_operand.vmem [shape: bf16[135,135], index: 5, kind: input, shape index: {}]   ;;  %s2304_s6 = inlined_call_operand.vmem [shape: f32[135,1], index: 6, kind: input, shape index: {}]   ;;  %s2305_s7 = inlined_call_operand.vmem [shape: bf16[8,135], index: 7, kind: input, shape index: {}]   ;;  %s2306_s8 = inlined_call_operand.vmem [shape: f32[8,1], index: 8, kind: input, shape index: {}]   ;;  %s2307_s9 = inlined_call_operand.hbm [shape: f32[8,128], index: 9, kind: output, shape index: {}]  }
   0x1   :  { %v34_v0 = vld [vmem:[%s2298_s0] sm:$0xff]  ;;  %1595 = vset.pattern.permute.xlu1 %v1709_v1  ;;  %v35_v2 = vld [vmem:[%s2298_s0 + $0x8] sm:$0xff]  ;;  %658 = vmatprep.subr.bf16.mxu1 %v1709_v1  ;;  %v36_v4 = vld [vmem:[%s2298_s0 + $0x10] sm:$0xff] }
   0x2   :  { %50 = vxpose.xlu0.b32.start [1/16] (narrow) %v34_v0, 48  ;;  %v102_v3 = vld [vmem:[%s2300_s2] sm:$0xff]  ;;  %v103_v5 = vld [vmem:[%s2300_s2 + $0x8] sm:$0xff]  ;;  %1548 = vmatprep.subr.bf16.mxu0 %v1710_v6  ;;  %v37_v7 = vld [vmem:[%s2298_s0 + $0x18] sm:$0xff] }
   0x3   :  { %121 = vperm.xlu1 %1595, %v102_v3   ;;  %v104_v8 = vld [vmem:[%s2300_s2 + $0x10] sm:$0xff]  ;;  %v38_v9 = vld [vmem:[%s2298_s0 + $0x20] sm:$0xff]  ;;  %v105_v10 = vld [vmem:[%s2300_s2 + $0x18] sm:$0xff]  ;;  %1554 = vmatprep.mubr.msk.bf16.mxu0 %vm1711_vm0, %v1710_v6 }
   0x4   :  { %v39_v11 = vld [vmem:[%s2298_s0 + $0x28] sm:$0xff]  ;;  %v106_v12 = vld [vmem:[%s2300_s2 + $0x20] sm:$0xff]  ;;  %v40_v13 = vld [vmem:[%s2298_s0 + $0x30] sm:$0xff] }
   0x5   :  { %v107_v14 = vld [vmem:[%s2300_s2 + $0x28] sm:$0xff]  ;;  %v41_v15 = vld [vmem:[%s2298_s0 + $0x38] sm:$0xff]  ;;  %v108_v16 = vld [vmem:[%s2300_s2 + $0x30] sm:$0xff] }
   0x6   :  { %51 = vxpose.xlu0.b32.cont [2/16] (narrow) %v35_v2, 48  ;;  %v42_v17 = vld [vmem:[%s2298_s0 + $0x40] sm:$0xff]  ;;  %v109_v18 = vld [vmem:[%s2300_s2 + $0x38] sm:$0xff]  ;;  %v43_v19 = vld [vmem:[%s2298_s0 + $0x48] sm:$0xff] }
   0x7   :  { %126 = vperm.xlu1 %1595, %v103_v5   ;;  %v110_v20 = vld [vmem:[%s2300_s2 + $0x40] sm:$0xff] }
   0xa   :  { %52 = vxpose.xlu0.b32.cont [3/16] (narrow) %v36_v4, 48 }
   0xb   :  { %131 = vperm.xlu1 %1595, %v104_v8  }
   0xe   :  { %53 = vxpose.xlu0.b32.cont [4/16] (narrow) %v37_v7, 48 }
   0xf   :  { %136 = vperm.xlu1 %1595, %v105_v10  }
  0x12   :  { %54 = vxpose.xlu0.b32.cont [5/16] (narrow) %v38_v9, 48 }
  0x13   :  { %141 = vperm.xlu1 %1595, %v106_v12  }
  0x16   :  { %55 = vxpose.xlu0.b32.cont [6/16] (narrow) %v39_v11, 48 }
  0x17   :  { %146 = vperm.xlu1 %1595, %v107_v14  }
  0x1a   :  { %56 = vxpose.xlu0.b32.cont [7/16] (narrow) %v40_v13, 48 }
  0x1b   :  { %151 = vperm.xlu1 %1595, %v108_v16  }
  0x1e   :  { %57 = vxpose.xlu0.b32.cont [8/16] (narrow) %v41_v15, 48 }
  0x1f   :  { %156 = vperm.xlu1 %1595, %v109_v18  }
  0x22   :  { %58 = vxpose.xlu0.b32.cont [9/16] (narrow) %v42_v17, 48 }
  0x23   :  { %14 = vsyncpa [#allocation3], 0  ;;  %v44_v21 = vld [vmem:[%s2298_s0 + $0x50] sm:$0xff]  ;;  %161 = vperm.xlu1 %1595, %v110_v20   ;;  %v111_v22 = vld [vmem:[%s2300_s2 + $0x48] sm:$0xff]  ;;  %vm275_vm1 = vcmask 1045504   ;;  %vm276_vm2 = vcmask 1046528  }
  0x24   :  { %v45_v23 = vld [vmem:[%s2298_s0 + $0x58] sm:$0xff]  ;;  %v112_v24 = vld [vmem:[%s2300_s2 + $0x50] sm:$0xff]  ;;  %v46_v25 = vld [vmem:[%s2298_s0 + $0x60] sm:$0xff]  ;;  %v1712_v11 = vmov 65535   ;;  %vm247_vm3 = vcmask 367616   ;;  %vm599_vm4 = vcmask 56320  }
  0x25   :  { %v113_v26 = vld [vmem:[%s2300_s2 + $0x58] sm:$0xff]  ;;  %v47_v27 = vld [vmem:[%s2298_s0 + $0x68] sm:$0xff]  ;;  %v114_v28 = vld [vmem:[%s2300_s2 + $0x60] sm:$0xff]  ;;  %v277_v12 = vsel %vm275_vm1, 4294967295, %v1712_v11  ;;  %vm651_vm5 = vcmask 1042432   ;;  %vm652_vm6 = vcmask 1043456  }
  0x26   :  { %59 = vxpose.xlu0.b32.cont [10/16] (narrow) %v43_v19, 48  ;;  %v48_v29 = vld [vmem:[%s2298_s0 + $0x70] sm:$0xff]  ;;  %v115_v30 = vld [vmem:[%s2300_s2 + $0x68] sm:$0xff]  ;;  %v49_v31 = vld [vmem:[%s2298_s0 + $0x78] sm:$0xff]  ;;  %v278_v15 = vsel %vm276_vm2, %v277_v12, 0 }
  0x27   :  { %166 = vperm.xlu1 %1595, %v111_v22   ;;  %v116_v32 = vld [vmem:[%s2300_s2 + $0x70] sm:$0xff]  ;;  %v117_v33 = vld [vmem:[%s2300_s2 + $0x78] sm:$0xff]  ;;  %v827_v34 = vld [vmem:[%s2302_s4] sm:$0xff] }
  0x28   :  { %v828_v35 = vld [vmem:[%s2302_s4 + $0x8] sm:$0xff]  ;;  %v829_v36 = vld [vmem:[%s2302_s4 + $0x10] sm:$0xff]  ;;  %v830_v37 = vld [vmem:[%s2302_s4 + $0x18] sm:$0xff] }
  0x29   :  { %v831_v38 = vld [vmem:[%s2302_s4 + $0x20] sm:$0xff]  ;;  %v832_v39 = vld [vmem:[%s2302_s4 + $0x28] sm:$0xff]  ;;  %v833_v40 = vld [vmem:[%s2302_s4 + $0x30] sm:$0xff] }
  0x2a   :  { %60 = vxpose.xlu0.b32.cont [11/16] (narrow) %v44_v21, 48  ;;  %v834_v41 = vld [vmem:[%s2302_s4 + $0x38] sm:$0xff]  ;;  %v835_v42 = vld [vmem:[%s2302_s4 + $0x40] sm:$0xff]  ;;  %v836_v44 = vld [vmem:[%s2302_s4 + $0x48] sm:$0xff] }
  0x2b   :  { %171 = vperm.xlu1 %1595, %v112_v24   ;;  %v118_v43 = vld [vmem:[%s2300_s2 + $0x80] sm:$0x7f]  ;;  %v838_v45 = vld [vmem:[%s2302_s4 + $0x58] sm:$0xff]  ;;  %v837_v46 = vld [vmem:[%s2302_s4 + $0x50] sm:$0xff] }
  0x2c   :  { %v840_v47 = vld [vmem:[%s2302_s4 + $0x68] sm:$0xff]  ;;  %v839_v48 = vld [vmem:[%s2302_s4 + $0x60] sm:$0xff]  ;;  %v842_v49 = vld [vmem:[%s2302_s4 + $0x78] sm:$0xff] }
  0x2d   :  { %v841_v50 = vld [vmem:[%s2302_s4 + $0x70] sm:$0xff]  ;;  %v1218_v51 = vld [vmem:[%s2304_s6] sm:$0xff]  ;;  %v1219_v54 = vld [vmem:[%s2304_s6 + $0x8] sm:$0xff] }
  0x2e   :  { %61 = vxpose.xlu0.b32.cont [12/16] (narrow) %v45_v23, 48  ;;  %v843_v52 = vld [vmem:[%s2302_s4 + $0x80] sm:$0x7f]  ;;  %v1220_v53 = vld [vmem:[%s2304_s6 + $0x10] sm:$0xff]  ;;  %v1221_v56 = vld [vmem:[%s2304_s6 + $0x18] sm:$0xff] }
  0x2f   :  { %176 = vperm.xlu1 %1595, %v113_v26   ;;  %v1222_v55 = vld [vmem:[%s2304_s6 + $0x20] sm:$0xff]  ;;  %v1224_v57 = vld [vmem:[%s2304_s6 + $0x30] sm:$0xff]  ;;  %v1223_v59 = vld [vmem:[%s2304_s6 + $0x28] sm:$0xff] }
  0x30   :  { %v1226_v60 = vld [vmem:[%s2304_s6 + $0x40] sm:$0xff]  ;;  %v1225_v63 = vld [vmem:[%s2304_s6 + $0x38] sm:$0xff]  ;;  %v1228_v0 = vld [vmem:[%s2304_s6 + $0x50] sm:$0xff] }
  0x31   :  { %v1227_v3 = vld [vmem:[%s2304_s6 + $0x48] sm:$0xff]  ;;  %v1230_v4 = vld [vmem:[%s2304_s6 + $0x60] sm:$0xff]  ;;  %v1229_v8 = vld [vmem:[%s2304_s6 + $0x58] sm:$0xff] }
  0x32   :  { %62 = vxpose.xlu0.b32.cont [13/16] (narrow) %v46_v25, 48  ;;  %v1232_v9 = vld [vmem:[%s2304_s6 + $0x70] sm:$0xff]  ;;  %v1231_v13 = vld [vmem:[%s2304_s6 + $0x68] sm:$0xff]  ;;  %v1234_v14 = vld [vmem:[%s2304_s6 + $0x80] sm:$0x7f] }
  0x33   :  { %181 = vperm.xlu1 %1595, %v114_v28   ;;  %v1233_v18 = vld [vmem:[%s2304_s6 + $0x78] sm:$0xff]  ;;  %v1597_v20 = vld [vmem:[%s2299_s1] sm:$0xff]   ;;  %v1598_v22 = vld [vmem:[%s2299_s1 + $0x8] sm:$0xff]  }
  0x34   :  { %v1364_v21 = vld [vmem:[%s2306_s8] sm:$0xff]  ;;  %v1599_v23 = vld [vmem:[%s2299_s1 + $0x10] sm:$0xff]   ;;  %v1600_v24 = vld [vmem:[%s2299_s1 + $0x18] sm:$0xff]  }
  0x35   :  { %v1601_v25 = vld [vmem:[%s2299_s1 + $0x20] sm:$0xff]   ;;  %v1602_v26 = vld [vmem:[%s2299_s1 + $0x28] sm:$0xff]   ;;  %v1604_v28 = vld [vmem:[%s2299_s1 + $0x38] sm:$0xff]  }
  0x36   :  { %63 = vxpose.xlu0.b32.cont [14/16] (narrow) %v47_v27, 48  ;;  %v1603_v27 = vld [vmem:[%s2299_s1 + $0x30] sm:$0xff]  }
  0x37   :  { %186 = vperm.xlu1 %1595, %v115_v30   ;;  %v1608_v30 = vld [vmem:[%s2301_s3 + $0x4] ss:$8 sps:$4 sm:$0xff]  }
  0x38   :  { %1489 = vmatprep.mubr.msk.bf16.mxu1 %vm599_vm4, %v1608_v30 }
  0x3a   :  { %64 = vxpose.xlu0.b32.cont [15/16] (narrow) %v48_v29, 48  ;;  %v1605_v29 = vld [vmem:[%s2299_s1 + $0x40] ss:$0 sps:$4 sm:$0xff]  }
  0x3b   :  { %191 = vperm.xlu1 %1595, %v116_v32  }
  0x3e   :  { %65 = vxpose.xlu0.b32.end [16/16] (narrow) %v49_v31, 48 }
  0x3f   :  { %196 = vperm.xlu1 %1595, %v117_v33  }
  0x43   :  { %846 = vperm.xlu1 %1595, %v827_v34  }
  0x47   :  { %851 = vperm.xlu1 %1595, %v828_v35  }
  0x4b   :  { %856 = vperm.xlu1 %1595, %v829_v36  }
  0x4f   :  { %861 = vperm.xlu1 %1595, %v830_v37  }
  0x53   :  { %866 = vperm.xlu1 %1595, %v831_v38  }
  0x57   :  { %871 = vperm.xlu1 %1595, %v832_v39  }
  0x5b   :  { %876 = vperm.xlu1 %1595, %v833_v40  }
  0x5f   :  { %881 = vperm.xlu1 %1595, %v834_v41  }
  0x63   :  { %886 = vperm.xlu1 %1595, %v835_v42  }
  0x67   :  { %1596 = vset.pattern.permute.xlu0 %v1709_v1  ;;  %891 = vperm.xlu1 %1595, %v836_v44  }
  0x68   :  { %201 = vperm.xlu0 %1596, %v118_v43  }
  0x6b   :  { %896 = vperm.xlu1 %1595, %v837_v46  }
  0x6c   :  { %901 = vperm.xlu0 %1596, %v838_v45  }
  0x6f   :  { %906 = vperm.xlu1 %1595, %v839_v48  }
  0x70   :  { %911 = vperm.xlu0 %1596, %v840_v47  }
  0x73   :  { %916 = vperm.xlu1 %1595, %v841_v50  }
  0x74   :  { %921 = vperm.xlu0 %1596, %v842_v49  }
  0x77   :  { %926 = vperm.xlu1 %1595, %v843_v52  }
  0x78   :  { %1237 = vperm.xlu0 %1596, %v1218_v51  }
  0x7b   :  { %1242 = vperm.xlu1 %1595, %v1219_v54  }
  0x7c   :  { %1247 = vperm.xlu0 %1596, %v1220_v53  }
  0x7f   :  { %1252 = vperm.xlu1 %1595, %v1221_v56  }
  0x80   :  { %1257 = vperm.xlu0 %1596, %v1222_v55  }
  0x82   :  { %v66_v58 = vpop.trf.xlu0  ;;  %v122_v31 = vpop.permute.xlu1 %121 }
  0x83   :  { %1262 = vperm.xlu1 %1595, %v1223_v59  }
  0x84   :  { %1267 = vperm.xlu0 %1596, %v1224_v57  }
  0x86   :  { %v67_v61 = vpop.trf.xlu0  ;;  %v127_v32 = vpop.permute.xlu1 %126 }
  0x87   :  { %v82_v62 = vpack.c.bf16 %v67_v61, %v66_v58  ;;  %1272 = vperm.xlu1 %1595, %v1225_v63  }
  0x88   :  { %1277 = vperm.xlu0 %1596, %v1226_v60  }
  0x89   :  { %1549 = vmatpush3.bf16.msra.mxu0 %v82_v62 }
  0x8a   :  { %v68_v2 = vpop.trf.xlu0  ;;  %1550 = vmatprep.subr.bf16.mxu0 %v1710_v6  ;;  %v132_v33 = vpop.permute.xlu1 %131 }
  0x8b   :  { %1282 = vperm.xlu1 %1595, %v1227_v3  }
  0x8c   :  { %1287 = vperm.xlu0 %1596, %v1228_v0  }
  0x8e   :  { %v69_v5 = vpop.trf.xlu0  ;;  %v137_v34 = vpop.permute.xlu1 %136 }
  0x8f   :  { %v83_v7 = vpack.c.bf16 %v69_v5, %v68_v2  ;;  %1292 = vperm.xlu1 %1595, %v1229_v8  }
  0x90   :  { %1297 = vperm.xlu0 %1596, %v1230_v4  }
  0x91   :  { %1551 = vmatpush3.bf16.msra.mxu0 %v83_v7 }
  0x92   :  { %v70_v10 = vpop.trf.xlu0  ;;  %1552 = vmatprep.subr.bf16.mxu0 %v1710_v6  ;;  %v142_v35 = vpop.permute.xlu1 %141 }
  0x93   :  { %1302 = vperm.xlu1 %1595, %v1231_v13  }
  0x94   :  { %1307 = vperm.xlu0 %1596, %v1232_v9  }
  0x96   :  { %v71_v16 = vpop.trf.xlu0  ;;  %v147_v36 = vpop.permute.xlu1 %146 }
  0x97   :  { %v84_v17 = vpack.c.bf16 %v71_v16, %v70_v10  ;;  %1312 = vperm.xlu1 %1595, %v1233_v18  }
  0x98   :  { %1317 = vperm.xlu0 %1596, %v1234_v14  }
  0x99   :  { %v280_v19 = vand.u32 %v278_v15, %v84_v17 }
  0x9a   :  { %v152_v42 = vpop.permute.xlu1 %151 }
  0x9b   :  { %1553 = vmatpush3.bf16.msra.mxu0 %v280_v19  ;;  %1367 = vperm.xlu1 %1595, %v1364_v21  }
  0x9c   :  { %1097 = vmatprep.subr.bf16.mxu0 %v1709_v1 }
  0x9e   :  { %1555 = vmatmul.mubr.msk.bf16.vlgmr.msra.gmra.mrb[0].mxu0 %vm247_vm3, %v1597_v20  ;;  %v157_v49 = vpop.permute.xlu1 %156 }
  0x9f   :  { %1558 = vmatprep.mubr.msk.bf16.mxu0 %vm1711_vm0, %v1710_v6 }
  0xa2   :  { %v162_v56 = vpop.permute.xlu1 %161 }
  0xa6   :  { %1559 = vmatmul.mubr.msk.bf16.gmra.mrb[4].mxu0 %vm247_vm3, %v1598_v22  ;;  %v167_v2 = vpop.permute.xlu1 %166 }
  0xa7   :  { %1562 = vmatprep.mubr.msk.bf16.mxu0 %vm1711_vm0, %v1710_v6 }
  0xaa   :  { %v172_v12 = vpop.permute.xlu1 %171 }
  0xae   :  { %1563 = vmatmul.mubr.msk.bf16.gmra.mrb[8].mxu0 %vm247_vm3, %v1599_v23  ;;  %v177_v19 = vpop.permute.xlu1 %176 }
  0xaf   :  { %1566 = vmatprep.mubr.msk.bf16.mxu0 %vm1711_vm0, %v1710_v6 }
  0xb6   :  { %1567 = vmatmul.mubr.msk.bf16.gmra.mrb[12].mxu0 %vm247_vm3, %v1600_v24 }
  0xb7   :  { %1570 = vmatprep.mubr.msk.bf16.mxu0 %vm1711_vm0, %v1710_v6 }
  0xbe   :  { %1571 = vmatmul.mubr.msk.bf16.gmra.mrb[16].mxu0 %vm247_vm3, %v1601_v25 }
  0xbf   :  { %1574 = vmatprep.mubr.msk.bf16.mxu0 %vm1711_vm0, %v1710_v6 }
  0xc6   :  { %1575 = vmatmul.mubr.msk.bf16.gmra.mrb[20].mxu0 %vm247_vm3, %v1602_v26  ;;  %v182_v26 = vpop.permute.xlu1 %181 }
  0xc7   :  { %1578 = vmatprep.mubr.msk.bf16.mxu0 %vm1711_vm0, %v1710_v6 }
  0xce   :  { %1579 = vmatmul.mubr.msk.bf16.gmra.mrb[24].mxu0 %vm247_vm3, %v1603_v27 }
  0xcf   :  { %1582 = vmatprep.mubr.msk.bf16.mxu0 %vm1711_vm0, %v1710_v6 }
  0xd6   :  { %1583 = vmatmul.mubr.msk.bf16.gmra.mrb[28].mxu0 %vm247_vm3, %v1604_v28 }
  0xd7   :  { %1586 = vmatprep.mubr.msk.bf16.mxu0 %vm1711_vm0, %v1710_v6 }
  0xde   :  { %1587 = vmatmul.mubr.msk.bf16.gmra.mrb[32].mxu0 %vm247_vm3, %v1605_v29 }
 0x171   :  { %v316_v6 = vpop.f32.mrb[0].mxu0 }
 0x172   :  { %v317_v37 = vadd.f32 %v316_v6, %v122_v31  ;;  %v1556_v38 = vpop.f32.mrb[1].mxu0 }
 0x173   :  { %v319_v39 = vpop.f32.mrb[2].mxu0 }
 0x174   :  { %v320_v40 = vadd.f32 %v319_v39, %v127_v32  ;;  %v1557_v41 = vpop.f32.mrb[3].mxu0  ;;  %v386_v43 = vmax.f32 %v317_v37, 0.0 }
 0x176   :  { %v387_v44 = vmax.f32 %v320_v40, 0.0 }
 0x178   :  { %v437_v45 = vpack.c.bf16 %v387_v44, %v386_v43 }
 0x179   :  { %v324_v46 = vpop.f32.mrb[4].mxu0 }
 0x17a   :  { %v325_v47 = vadd.f32 %v324_v46, %v132_v33  ;;  %v1560_v48 = vpop.f32.mrb[5].mxu0  ;;  %659 = vmatpush1.bf16.msra.mxu1 %v437_v45 }
 0x17b   :  { %v327_v50 = vpop.f32.mrb[6].mxu0  ;;  %660 = vmatprep.subr.bf16.mxu1 %v1709_v1 }
 0x17c   :  { %v328_v51 = vadd.f32 %v327_v50, %v137_v34  ;;  %v1561_v52 = vpop.f32.mrb[7].mxu0  ;;  %v388_v53 = vmax.f32 %v325_v47, 0.0 }
 0x17e   :  { %v389_v54 = vmax.f32 %v328_v51, 0.0 }
 0x180   :  { %v438_v55 = vpack.c.bf16 %v389_v54, %v388_v53 }
 0x181   :  { %v332_v57 = vpop.f32.mrb[8].mxu0 }
 0x182   :  { %v333_v58 = vadd.f32 %v332_v57, %v142_v35  ;;  %v1564_v59 = vpop.f32.mrb[9].mxu0  ;;  %661 = vmatpush1.bf16.msra.mxu1 %v438_v55  ;;  %v187_v35 = vpop.permute.xlu1 %186 }
 0x183   :  { %v335_v60 = vpop.f32.mrb[10].mxu0  ;;  %662 = vmatprep.subr.bf16.mxu1 %v1709_v1 }
 0x184   :  { %v336_v61 = vadd.f32 %v335_v60, %v147_v36  ;;  %v1565_v62 = vpop.f32.mrb[11].mxu0  ;;  %v390_v63 = vmax.f32 %v333_v58, 0.0  ;;  %v653_v58 = vsel %vm651_vm5, 4294967295, %v1712_v11  ;;  %v1609_v11 = vld [vmem:[%s2301_s3 + $0x14] ss:$8 sps:$4 sm:$0xff]  }
 0x186   :  { %v391_v0 = vmax.f32 %v336_v61, 0.0 }
 0x188   :  { %v439_v3 = vpack.c.bf16 %v391_v0, %v390_v63  ;;  %v2043_v0 = vsel %vm652_vm6, %v653_v58, 0 }
 0x189   :  { %v340_v4 = vpop.f32.mrb[12].mxu0 }
 0x18a   :  { %v341_v5 = vadd.f32 %v340_v4, %v152_v42  ;;  %v1568_v7 = vpop.f32.mrb[13].mxu0  ;;  %663 = vmatpush1.bf16.msra.mxu1 %v439_v3  ;;  %v192_v42 = vpop.permute.xlu1 %191  ;;  %v1606_v4 = vld [vmem:[%s2301_s3] ss:$8 sps:$4 sm:$0xff]  }
 0x18b   :  { %v343_v8 = vpop.f32.mrb[14].mxu0  ;;  %664 = vmatprep.subr.bf16.mxu1 %v1709_v1  ;;  %v1612_v7 = vld [vmem:[%s2301_s3 + $0x24] ss:$8 sps:$4 sm:$0xff]  }
 0x18c   :  { %v344_v9 = vadd.f32 %v343_v8, %v157_v49  ;;  %v1569_v10 = vpop.f32.mrb[15].mxu0  ;;  %v392_v13 = vmax.f32 %v341_v5, 0.0  ;;  %v1611_v5 = vld [vmem:[%s2301_s3 + $0x10] ss:$8 sps:$4 sm:$0xff]   ;;  %v1614_v8 = vld [vmem:[%s2301_s3 + $0x20] ss:$8 sps:$4 sm:$0xff]  }
 0x18d   :  { %v1617_v10 = vld [vmem:[%s2301_s3 + $0x30] ss:$8 sps:$4 sm:$0xff]  }
 0x18e   :  { %v393_v14 = vmax.f32 %v344_v9, 0.0  ;;  %v197_v49 = vpop.permute.xlu1 %196  ;;  %v1615_v9 = vld [vmem:[%s2301_s3 + $0x34] ss:$8 sps:$4 sm:$0xff]  }
 0x190   :  { %v440_v15 = vpack.c.bf16 %v393_v14, %v392_v13  ;;  %v1620_v13 = vld [vmem:[%s2301_s3 + $0x40] ss:$8 sps:$4 sm:$0xff]   ;;  %v1621_v14 = vld [vmem:[%s2301_s3 + $0x54] ss:$8 sps:$4 sm:$0xff]  }
 0x191   :  { %v348_v16 = vpop.f32.mrb[16].mxu0 }
 0x192   :  { %v349_v17 = vadd.f32 %v348_v16, %v162_v56  ;;  %v1572_v18 = vpop.f32.mrb[17].mxu0  ;;  %665 = vmatpush1.bf16.msra.mxu1 %v440_v15  ;;  %v202_v56 = vpop.permute.xlu0 %201  ;;  %v1623_v15 = vld [vmem:[%s2301_s3 + $0x50] ss:$8 sps:$4 sm:$0xff]   ;;  %v1624_v16 = vld [vmem:[%s2301_s3 + $0x64] ss:$8 sps:$4 sm:$0xff]  }
 0x193   :  { %v351_v20 = vpop.f32.mrb[18].mxu0  ;;  %666 = vmatprep.subr.bf16.mxu1 %v1709_v1  ;;  %v1627_v18 = vld [vmem:[%s2301_s3 + $0x74] ss:$8 sps:$4 sm:$0xff]  }
 0x194   :  { %v352_v21 = vadd.f32 %v351_v20, %v167_v2  ;;  %v1573_v22 = vpop.f32.mrb[19].mxu0  ;;  %v394_v23 = vmax.f32 %v349_v17, 0.0  ;;  %v1626_v17 = vld [vmem:[%s2301_s3 + $0x60] ss:$8 sps:$4 sm:$0xff]   ;;  %v1630_v20 = vld [vmem:[%s2301_s3 + $0x84] ss:$8 sps:$4 sm:$0xff]  }
 0x195   :  { %v1633_v22 = vld [vmem:[%s2301_s3 + $0x94] ss:$8 sps:$4 sm:$0xff]  }
 0x196   :  { %v395_v24 = vmax.f32 %v352_v21, 0.0  ;;  %v1632_v21 = vld [vmem:[%s2301_s3 + $0x80] ss:$8 sps:$4 sm:$0xff]  }
 0x198   :  { %v441_v25 = vpack.c.bf16 %v395_v24, %v394_v23  ;;  %v1635_v23 = vld [vmem:[%s2301_s3 + $0x90] ss:$8 sps:$4 sm:$0xff]   ;;  %v1638_v24 = vld [vmem:[%s2303_s5 + $0x4] ss:$8 sps:$4 sm:$0xff]  }
 0x199   :  { %v356_v27 = vpop.f32.mrb[20].mxu0  ;;  %1524 = vmatprep.mubr.msk.bf16.mxu0 %vm599_vm4, %v1638_v24 }
 0x19a   :  { %v357_v28 = vadd.f32 %v356_v27, %v172_v12  ;;  %v1576_v29 = vpop.f32.mrb[21].mxu0  ;;  %667 = vmatpush1.bf16.msra.mxu1 %v441_v25  ;;  %v1618_v12 = vld [vmem:[%s2301_s3 + $0x44] ss:$8 sps:$4 sm:$0xff]   ;;  %v1645_v27 = vld [vmem:[%s2301_s3 + $0xb4] ss:$8 sps:$4 sm:$0xff]  }
 0x19b   :  { %v359_v30 = vpop.f32.mrb[22].mxu0  ;;  %668 = vmatprep.subr.bf16.mxu1 %v1709_v1  ;;  %v1639_v25 = vld [vmem:[%s2301_s3 + $0xa4] ss:$8 sps:$4 sm:$0xff]  }
 0x19c   :  { %v360_v31 = vadd.f32 %v359_v30, %v177_v19  ;;  %v1577_v32 = vpop.f32.mrb[23].mxu0  ;;  %v396_v33 = vmax.f32 %v357_v28, 0.0  ;;  %v1629_v19 = vld [vmem:[%s2301_s3 + $0x70] ss:$8 sps:$4 sm:$0xff]   ;;  %v1651_v29 = vld [vmem:[%s2301_s3 + $0xc4] ss:$8 sps:$4 sm:$0xff]  }
 0x19d   :  { %v1647_v28 = vld [vmem:[%s2301_s3 + $0xb0] ss:$8 sps:$4 sm:$0xff]   ;;  %v1653_v30 = vld [vmem:[%s2301_s3 + $0xc0] ss:$8 sps:$4 sm:$0xff]  }
 0x19e   :  { %v397_v34 = vmax.f32 %v360_v31, 0.0  ;;  %v1657_v31 = vld [vmem:[%s2301_s3 + $0xd4] ss:$8 sps:$4 sm:$0xff]   ;;  %v1659_v32 = vld [vmem:[%s2301_s3 + $0xd0] ss:$8 sps:$4 sm:$0xff]  }
 0x1a0   :  { %v442_v36 = vpack.c.bf16 %v397_v34, %v396_v33  ;;  %v847_v33 = vpop.permute.xlu1 %846  ;;  %v1663_v34 = vld [vmem:[%s2301_s3 + $0xe4] ss:$8 sps:$4 sm:$0xff]  }
 0x1a1   :  { %v364_v6 = vpop.f32.mrb[24].mxu0 }
 0x1a2   :  { %v365_v37 = vadd.f32 %v364_v6, %v182_v26  ;;  %v1580_v38 = vpop.f32.mrb[25].mxu0  ;;  %669 = vmatpush1.bf16.msra.mxu1 %v442_v36  ;;  %v1641_v26 = vld [vmem:[%s2301_s3 + $0xa0] ss:$8 sps:$4 sm:$0xff]   ;;  %v1669_v6 = vld [vmem:[%s2301_s3 + $0xf4] ss:$8 sps:$4 sm:$0xff]  }
 0x1a3   :  { %v367_v39 = vpop.f32.mrb[26].mxu0  ;;  %670 = vmatprep.subr.bf16.mxu1 %v1709_v1  ;;  %v1671_v38 = vld [vmem:[%s2301_s3 + $0xf0] ss:$8 sps:$4 sm:$0xff]  }
 0x1a4   :  { %v368_v40 = vadd.f32 %v367_v39, %v187_v35  ;;  %v1581_v41 = vpop.f32.mrb[27].mxu0  ;;  %v398_v43 = vmax.f32 %v365_v37, 0.0  ;;  %v1665_v35 = vld [vmem:[%s2301_s3 + $0xe0] ss:$8 sps:$4 sm:$0xff]   ;;  %v852_v36 = vpop.permute.xlu1 %851  ;;  %v1675_v39 = vld [vmem:[%s2301_s3 + $0x104] ss:$8 sps:$4 sm:$0xff]  }
 0x1a6   :  { %v399_v44 = vmax.f32 %v368_v40, 0.0 }
 0x1a8   :  { %v443_v45 = vpack.c.bf16 %v399_v44, %v398_v43  ;;  %v857_v37 = vpop.permute.xlu1 %856 }
 0x1a9   :  { %v372_v46 = vpop.f32.mrb[28].mxu0 }
 0x1aa   :  { %v373_v47 = vadd.f32 %v372_v46, %v192_v42  ;;  %v1584_v48 = vpop.f32.mrb[29].mxu0  ;;  %671 = vmatpush1.bf16.msra.mxu1 %v443_v45  ;;  %v1677_v42 = vld [vmem:[%s2301_s3 + $0x100] ss:$8 sps:$4 sm:$0xff]  }
 0x1ab   :  { %v375_v50 = vpop.f32.mrb[30].mxu0  ;;  %672 = vmatprep.subr.bf16.mxu1 %v1709_v1 }
 0x1ac   :  { %v376_v51 = vadd.f32 %v375_v50, %v197_v49  ;;  %v1585_v52 = vpop.f32.mrb[31].mxu0  ;;  %v400_v53 = vmax.f32 %v373_v47, 0.0  ;;  %v862_v40 = vpop.permute.xlu1 %861 }
 0x1ae   :  { %v401_v54 = vmax.f32 %v376_v51, 0.0 }
 0x1b0   :  { %v444_v55 = vpack.c.bf16 %v401_v54, %v400_v53  ;;  %v867_v48 = vpop.permute.xlu1 %866 }
 0x1b1   :  { %v380_v57 = vpop.f32.mrb[32].mxu0 }
 0x1b2   :  { %v381_v59 = vadd.f32 %v380_v57, %v202_v56  ;;  %v1588_v60 = vpop.f32.mrb[33].mxu0  ;;  %673 = vmatpush1.bf16.msra.mxu1 %v444_v55 }
 0x1b3   :  { %v383_v61 = vpop.f32.mrb[34].mxu0  ;;  %674 = vmatprep.subr.bf16.mxu1 %v1709_v1 }
 0x1b4   :  { %v402_v62 = vmax.f32 %v381_v59, 0.0  ;;  %v1589_v63 = vpop.f32.mrb[35].mxu0  ;;  %v872_v55 = vpop.permute.xlu1 %871 }
 0x1b6   :  { %v445_v2 = vpack.c.bf16 %v402_v62, %v402_v62 }
 0x1b8   :  { %v656_v3 = vand.u32 %v2043_v0, %v445_v2  ;;  %v877_v62 = vpop.permute.xlu1 %876 }
 0x1ba   :  { %675 = vmatpush1.bf16.msra.mxu1 %v656_v3 }
 0x1bd   :  { %691 = vmatmul.mubr.bf16.vlgmr.msra.gmra.mrb[0].mxu1 %v1606_v4 }
 0x1be   :  { %1490 = vmatprep.mubr.msk.bf16.mxu1 %vm599_vm4, %v1609_v11 }
 0x1c5   :  { %699 = vmatmul.mubr.bf16.gmra.mrb[4].mxu1 %v1611_v5 }
 0x1c6   :  { %1491 = vmatprep.mubr.msk.bf16.mxu1 %vm599_vm4, %v1612_v7 }
 0x1cd   :  { %707 = vmatmul.mubr.bf16.gmra.mrb[8].mxu1 %v1614_v8 }
 0x1ce   :  { %1492 = vmatprep.mubr.msk.bf16.mxu1 %vm599_vm4, %v1615_v9  ;;  %v882_v9 = vpop.permute.xlu1 %881 }
 0x1d5   :  { %715 = vmatmul.mubr.bf16.gmra.mrb[12].mxu1 %v1617_v10 }
 0x1d6   :  { %1493 = vmatprep.mubr.msk.bf16.mxu1 %vm599_vm4, %v1618_v12 }
 0x1dd   :  { %723 = vmatmul.mubr.bf16.gmra.mrb[16].mxu1 %v1620_v13 }
 0x1de   :  { %1494 = vmatprep.mubr.msk.bf16.mxu1 %vm599_vm4, %v1621_v14 }
 0x1e5   :  { %731 = vmatmul.mubr.bf16.gmra.mrb[20].mxu1 %v1623_v15 }
 0x1e6   :  { %1495 = vmatprep.mubr.msk.bf16.mxu1 %vm599_vm4, %v1624_v16 }
 0x1ed   :  { %739 = vmatmul.mubr.bf16.gmra.mrb[24].mxu1 %v1626_v17 }
 0x1ee   :  { %1496 = vmatprep.mubr.msk.bf16.mxu1 %vm599_vm4, %v1627_v18  ;;  %v887_v18 = vpop.permute.xlu1 %886 }
 0x1f5   :  { %747 = vmatmul.mubr.bf16.gmra.mrb[28].mxu1 %v1629_v19 }
 0x1f6   :  { %1497 = vmatprep.mubr.msk.bf16.mxu1 %vm599_vm4, %v1630_v20 }
 0x1fd   :  { %755 = vmatmul.mubr.bf16.gmra.mrb[32].mxu1 %v1632_v21 }
 0x1fe   :  { %1498 = vmatprep.mubr.msk.bf16.mxu1 %vm599_vm4, %v1633_v22 }
 0x205   :  { %763 = vmatmul.mubr.bf16.gmra.mrb[36].mxu1 %v1635_v23 }
 0x206   :  { %1499 = vmatprep.mubr.msk.bf16.mxu1 %vm599_vm4, %v1639_v25  ;;  %v892_v25 = vpop.permute.xlu1 %891 }
 0x20d   :  { %771 = vmatmul.mubr.bf16.gmra.mrb[40].mxu1 %v1641_v26 }
 0x20e   :  { %1500 = vmatprep.mubr.msk.bf16.mxu1 %vm599_vm4, %v1645_v27 }
 0x215   :  { %779 = vmatmul.mubr.bf16.gmra.mrb[44].mxu1 %v1647_v28 }
 0x216   :  { %1501 = vmatprep.mubr.msk.bf16.mxu1 %vm599_vm4, %v1651_v29 }
 0x21d   :  { %787 = vmatmul.mubr.bf16.gmra.mrb[48].mxu1 %v1653_v30 }
 0x21e   :  { %1502 = vmatprep.mubr.msk.bf16.mxu1 %vm599_vm4, %v1657_v31 }
 0x225   :  { %795 = vmatmul.mubr.bf16.gmra.mrb[52].mxu1 %v1659_v32  ;;  %v897_v32 = vpop.permute.xlu1 %896 }
 0x226   :  { %1503 = vmatprep.mubr.msk.bf16.mxu1 %vm599_vm4, %v1663_v34 }
 0x22d   :  { %803 = vmatmul.mubr.bf16.gmra.mrb[56].mxu1 %v1665_v35 }
 0x22e   :  { %1504 = vmatprep.mubr.msk.bf16.mxu1 %vm599_vm4, %v1669_v6 }
 0x235   :  { %811 = vmatmul.mubr.bf16.gmra.mrb[60].mxu1 %v1671_v38 }
 0x236   :  { %1505 = vmatprep.mubr.msk.bf16.mxu1 %vm599_vm4, %v1675_v39 }
 0x23d   :  { %819 = vmatmul.mubr.bf16.gmra.mrb[64].mxu1 %v1677_v42  ;;  %v907_v42 = vpop.permute.xlu1 %906 }
 0x290   :  { %v692_v41 = vpop.f32.mrb[0].mxu1 }
 0x291   :  { %v929_v43 = vadd.f32 %v847_v33, %v692_v41  ;;  %v694_v44 = vpop.f32.mrb[1].mxu1 }
 0x292   :  { %v695_v45 = vpop.f32.mrb[2].mxu1 }
 0x293   :  { %v930_v46 = vadd.f32 %v852_v36, %v695_v45  ;;  %v697_v47 = vpop.f32.mrb[3].mxu1  ;;  %v946_v49 = vmax.f32 %v929_v43, 0.0  ;;  %v902_v36 = vpop.permute.xlu0 %901 }
 0x295   :  { %v947_v50 = vmax.f32 %v930_v46, 0.0 }
 0x297   :  { %v980_v51 = vpack.c.bf16 %v947_v50, %v946_v49  ;;  %v912_v46 = vpop.permute.xlu0 %911 }
 0x298   :  { %v700_v52 = vpop.f32.mrb[4].mxu1 }
 0x299   :  { %v931_v53 = vadd.f32 %v857_v37, %v700_v52  ;;  %v702_v54 = vpop.f32.mrb[5].mxu1  ;;  %1098 = vmatpush1.bf16.msra.mxu0 %v980_v51 }
 0x29a   :  { %v703_v56 = vpop.f32.mrb[6].mxu1  ;;  %1099 = vmatprep.subr.bf16.mxu0 %v1709_v1 }
 0x29b   :  { %v932_v57 = vadd.f32 %v862_v40, %v703_v56  ;;  %v705_v58 = vpop.f32.mrb[7].mxu1  ;;  %v948_v59 = vmax.f32 %v931_v53, 0.0  ;;  %v917_v53 = vpop.permute.xlu1 %916 }
 0x29d   :  { %v949_v60 = vmax.f32 %v932_v57, 0.0  ;;  %v922_v57 = vpop.permute.xlu0 %921 }
 0x29f   :  { %v981_v61 = vpack.c.bf16 %v949_v60, %v948_v59 }
 0x2a0   :  { %v708_v63 = vpop.f32.mrb[8].mxu1 }
 0x2a1   :  { %v933_v2 = vadd.f32 %v867_v48, %v708_v63  ;;  %v710_v3 = vpop.f32.mrb[9].mxu1  ;;  %1100 = vmatpush1.bf16.msra.mxu0 %v981_v61 }
 0x2a2   :  { %v711_v4 = vpop.f32.mrb[10].mxu1  ;;  %1101 = vmatprep.subr.bf16.mxu0 %v1709_v1 }
 0x2a3   :  { %v934_v11 = vadd.f32 %v872_v55, %v711_v4  ;;  %v713_v5 = vpop.f32.mrb[11].mxu1  ;;  %v950_v7 = vmax.f32 %v933_v2, 0.0  ;;  %v927_v2 = vpop.permute.xlu1 %926 }
 0x2a5   :  { %v951_v8 = vmax.f32 %v934_v11, 0.0 }
 0x2a7   :  { %v982_v10 = vpack.c.bf16 %v951_v8, %v950_v7 }
 0x2a8   :  { %v716_v12 = vpop.f32.mrb[12].mxu1 }
 0x2a9   :  { %v935_v13 = vadd.f32 %v877_v62, %v716_v12  ;;  %v718_v14 = vpop.f32.mrb[13].mxu1  ;;  %1102 = vmatpush1.bf16.msra.mxu0 %v982_v10  ;;  %v1636_v12 = vld [vmem:[%s2303_s5] ss:$8 sps:$4 sm:$0xff]  }
 0x2aa   :  { %v719_v15 = vpop.f32.mrb[14].mxu1  ;;  %1103 = vmatprep.subr.bf16.mxu0 %v1709_v1  ;;  %v1644_v14 = vld [vmem:[%s2303_s5 + $0x10] ss:$8 sps:$4 sm:$0xff]  }
 0x2ab   :  { %v936_v16 = vadd.f32 %v882_v9, %v719_v15  ;;  %v721_v17 = vpop.f32.mrb[15].mxu1  ;;  %v952_v19 = vmax.f32 %v935_v13, 0.0  ;;  %v1642_v13 = vld [vmem:[%s2303_s5 + $0x14] ss:$8 sps:$4 sm:$0xff]   ;;  %v1648_v15 = vld [vmem:[%s2303_s5 + $0x24] ss:$8 sps:$4 sm:$0xff]  }
 0x2ac   :  { %v1654_v17 = vld [vmem:[%s2303_s5 + $0x34] ss:$8 sps:$4 sm:$0xff]  }
 0x2ad   :  { %v953_v20 = vmax.f32 %v936_v16, 0.0  ;;  %v1650_v16 = vld [vmem:[%s2303_s5 + $0x20] ss:$8 sps:$4 sm:$0xff]  }
 0x2af   :  { %v983_v21 = vpack.c.bf16 %v953_v20, %v952_v19  ;;  %v1660_v19 = vld [vmem:[%s2303_s5 + $0x44] ss:$8 sps:$4 sm:$0xff]   ;;  %v1662_v20 = vld [vmem:[%s2303_s5 + $0x40] ss:$8 sps:$4 sm:$0xff]  }
 0x2b0   :  { %v724_v22 = vpop.f32.mrb[16].mxu1 }
 0x2b1   :  { %v937_v23 = vadd.f32 %v887_v18, %v724_v22  ;;  %v726_v24 = vpop.f32.mrb[17].mxu1  ;;  %1104 = vmatpush1.bf16.msra.mxu0 %v983_v21  ;;  %v1656_v18 = vld [vmem:[%s2303_s5 + $0x30] ss:$8 sps:$4 sm:$0xff]   ;;  %v1666_v21 = vld [vmem:[%s2303_s5 + $0x54] ss:$8 sps:$4 sm:$0xff]  }
 0x2b2   :  { %v727_v26 = vpop.f32.mrb[18].mxu1  ;;  %1105 = vmatprep.subr.bf16.mxu0 %v1709_v1  ;;  %v1668_v22 = vld [vmem:[%s2303_s5 + $0x50] ss:$8 sps:$4 sm:$0xff]   ;;  %v1674_v24 = vld [vmem:[%s2303_s5 + $0x60] ss:$8 sps:$4 sm:$0xff]  }
 0x2b3   :  { %v938_v27 = vadd.f32 %v892_v25, %v727_v26  ;;  %v729_v28 = vpop.f32.mrb[19].mxu1  ;;  %v954_v29 = vmax.f32 %v937_v23, 0.0  ;;  %v1672_v23 = vld [vmem:[%s2303_s5 + $0x64] ss:$8 sps:$4 sm:$0xff]   ;;  %v1678_v25 = vld [vmem:[%s2303_s5 + $0x74] ss:$8 sps:$4 sm:$0xff]  }
 0x2b4   :  { %v979_v26 = vld [vmem:[%s2303_s5 + $0x80] sm:$0xff] }
 0x2b5   :  { %v955_v30 = vmax.f32 %v938_v27, 0.0  ;;  %v1680_v27 = vld [vmem:[%s2303_s5 + $0x70] ss:$8 sps:$4 sm:$0xff]   ;;  %v1523_v28 = vcombine.high %v979_v26, %v979_v26 }
 0x2b7   :  { %v984_v31 = vpack.c.bf16 %v955_v30, %v954_v29  ;;  %v1522_v29 = vcombine.low %v979_v26, %v979_v26 }
 0x2b8   :  { %v732_v33 = vpop.f32.mrb[20].mxu1 }
 0x2b9   :  { %v939_v34 = vadd.f32 %v897_v32, %v732_v33  ;;  %v734_v35 = vpop.f32.mrb[21].mxu1  ;;  %1106 = vmatpush1.bf16.msra.mxu0 %v984_v31 }
 0x2ba   :  { %v735_v6 = vpop.f32.mrb[22].mxu1  ;;  %1107 = vmatprep.subr.bf16.mxu0 %v1709_v1 }
 0x2bb   :  { %v940_v37 = vadd.f32 %v902_v36, %v735_v6  ;;  %v737_v38 = vpop.f32.mrb[23].mxu1  ;;  %v956_v39 = vmax.f32 %v939_v34, 0.0 }
 0x2bd   :  { %v957_v40 = vmax.f32 %v940_v37, 0.0 }
 0x2bf   :  { %v985_v41 = vpack.c.bf16 %v957_v40, %v956_v39 }
 0x2c0   :  { %v740_v43 = vpop.f32.mrb[24].mxu1 }
 0x2c1   :  { %v941_v44 = vadd.f32 %v907_v42, %v740_v43  ;;  %v742_v45 = vpop.f32.mrb[25].mxu1  ;;  %1108 = vmatpush1.bf16.msra.mxu0 %v985_v41 }
 0x2c2   :  { %v743_v47 = vpop.f32.mrb[26].mxu1  ;;  %1109 = vmatprep.subr.bf16.mxu0 %v1709_v1 }
 0x2c3   :  { %v942_v48 = vadd.f32 %v912_v46, %v743_v47  ;;  %v745_v49 = vpop.f32.mrb[27].mxu1  ;;  %v958_v50 = vmax.f32 %v941_v44, 0.0 }
 0x2c5   :  { %v959_v51 = vmax.f32 %v942_v48, 0.0 }
 0x2c7   :  { %v986_v52 = vpack.c.bf16 %v959_v51, %v958_v50 }
 0x2c8   :  { %v748_v54 = vpop.f32.mrb[28].mxu1 }
 0x2c9   :  { %v943_v55 = vadd.f32 %v917_v53, %v748_v54  ;;  %v750_v56 = vpop.f32.mrb[29].mxu1  ;;  %1110 = vmatpush1.bf16.msra.mxu0 %v986_v52 }
 0x2ca   :  { %v751_v58 = vpop.f32.mrb[30].mxu1  ;;  %1111 = vmatprep.subr.bf16.mxu0 %v1709_v1 }
 0x2cb   :  { %v944_v59 = vadd.f32 %v922_v57, %v751_v58  ;;  %v753_v60 = vpop.f32.mrb[31].mxu1  ;;  %v960_v61 = vmax.f32 %v943_v55, 0.0 }
 0x2cd   :  { %v961_v62 = vmax.f32 %v944_v59, 0.0 }
 0x2cf   :  { %v987_v63 = vpack.c.bf16 %v961_v62, %v960_v61  ;;  %v2258_v61 = vld [vmem:[%s2305_s7] sm:$0xff]  ;;  %s1713_s7 = smov [#allocation2]  }
 0x2d0   :  { %v756_v3 = vpop.f32.mrb[32].mxu1  ;;  %v1534_v62 = vcombine.high %v2258_v61, %v2258_v61  ;;  %s1429_s19 = sshll.u32 %s1713_s7, 4  ;;  %s1430_s19 = int_to_ptr.vmem [resolvable:$true] %s1429_s19 }
 0x2d1   :  { %v945_v4 = vadd.f32 %v927_v2, %v756_v3  ;;  %v758_v11 = vpop.f32.mrb[33].mxu1  ;;  %1112 = vmatpush1.bf16.msra.mxu0 %v987_v63  ;;  %s1685_s20 = scalar_lea.vmem %s1430_s19, 128  ;;  %p1690_p1 = scmp.lt.s32.totalorder %s1430_s19, %s1430_s19 }
 0x2d2   :  { %v2172_v5 = vpop.f32.mrb[34].mxu1  ;;  %1113 = vmatprep.subr.bf16.mxu0 %v1709_v1  ;;  %p1686_p0 = scmp.ne.s32.totalorder %s1430_s19, %s1685_s20  ;;  %p1691_p2 = scmp.lt.s32.totalorder %s1685_s20, %s1685_s20 }
 0x2d3   :  { %v962_v7 = vmax.f32 %v945_v4, 0.0  ;;  %v761_v8 = vpop.f32.mrb[35].mxu1  ;;  %v1238_v4 = vpop.permute.xlu0 %1237 }
 0x2d4   :  { %p1692_p3 = por %p1691_p2, %p1690_p1 }
 0x2d5   :  { %v988_v9 = vpack.c.bf16 %v962_v7, %v962_v7 }
 0x2d6   :  { %p1693_p4 = pnand %p1692_p3, %p1686_p0 }
 0x2d7   :  { %v1095_v10 = vand.u32 %v988_v9, %v2043_v0 }
 0x2d8   :  { %v764_v30 = vpop.f32.mrb[36].mxu1 }
 0x2d9   :  { %1114 = vmatpush1.bf16.msra.mxu0 %v1095_v10  ;;  %v766_v31 = vpop.f32.mrb[37].mxu1  ;;  %v1243_v10 = vpop.permute.xlu1 %1242 }
 0x2da   :  { %1382 = vmatprep.subr.bf16.mxu0 %v1709_v1  ;;  %v767_v32 = vpop.f32.mrb[38].mxu1 }
 0x2db   :  { %v769_v33 = vpop.f32.mrb[39].mxu1 }
 0x2dc   :  { %1130 = vmatmul.mubr.bf16.vlgmr.msra.gmra.mrb[36].mxu0 %v1636_v12 }
 0x2dd   :  { %1525 = vmatprep.mubr.msk.bf16.mxu0 %vm599_vm4, %v1642_v13 }
 0x2e0   :  { %v772_v34 = vpop.f32.mrb[40].mxu1 }
 0x2e1   :  { %v774_v35 = vpop.f32.mrb[41].mxu1 }
 0x2e2   :  { %v775_v36 = vpop.f32.mrb[42].mxu1 }
 0x2e3   :  { %v777_v6 = vpop.f32.mrb[43].mxu1 }
 0x2e4   :  { %1138 = vmatmul.mubr.bf16.gmra.mrb[40].mxu0 %v1644_v14 }
 0x2e5   :  { %1526 = vmatprep.mubr.msk.bf16.mxu0 %vm599_vm4, %v1648_v15 }
 0x2e8   :  { %v780_v37 = vpop.f32.mrb[44].mxu1 }
 0x2e9   :  { %v782_v38 = vpop.f32.mrb[45].mxu1 }
 0x2ea   :  { %v2233_v39 = vpop.f32.mrb[46].mxu1 }
 0x2eb   :  { %v785_v40 = vpop.f32.mrb[47].mxu1 }
 0x2ec   :  { %1146 = vmatmul.mubr.bf16.gmra.mrb[44].mxu0 %v1650_v16 }
 0x2ed   :  { %1527 = vmatprep.mubr.msk.bf16.mxu0 %vm599_vm4, %v1654_v17 }
 0x2f0   :  { %v2235_v41 = vpop.f32.mrb[48].mxu1 }
 0x2f1   :  { %v790_v42 = vpop.f32.mrb[49].mxu1 }
 0x2f2   :  { %v2237_v43 = vpop.f32.mrb[50].mxu1 }
 0x2f3   :  { %v793_v44 = vpop.f32.mrb[51].mxu1 }
 0x2f4   :  { %1154 = vmatmul.mubr.bf16.gmra.mrb[48].mxu0 %v1656_v18 }
 0x2f5   :  { %1528 = vmatprep.mubr.msk.bf16.mxu0 %vm599_vm4, %v1660_v19  ;;  %v1248_v19 = vpop.permute.xlu0 %1247 }
 0x2f8   :  { %v2239_v45 = vpop.f32.mrb[52].mxu1 }
 0x2f9   :  { %v798_v46 = vpop.f32.mrb[53].mxu1  ;;  %v1258_v31 = vpop.permute.xlu0 %1257 }
 0x2fa   :  { %v2241_v47 = vpop.f32.mrb[54].mxu1 }
 0x2fb   :  { %v801_v48 = vpop.f32.mrb[55].mxu1 }
 0x2fc   :  { %1162 = vmatmul.mubr.bf16.gmra.mrb[52].mxu0 %v1662_v20 }
 0x2fd   :  { %1529 = vmatprep.mubr.msk.bf16.mxu0 %vm599_vm4, %v1666_v21 }
 0x300   :  { %v2243_v49 = vpop.f32.mrb[56].mxu1 }
 0x301   :  { %v806_v50 = vpop.f32.mrb[57].mxu1 }
 0x302   :  { %v2245_v51 = vpop.f32.mrb[58].mxu1 }
 0x303   :  { %v809_v52 = vpop.f32.mrb[59].mxu1 }
 0x304   :  { %1170 = vmatmul.mubr.bf16.gmra.mrb[56].mxu0 %v1668_v22  ;;  %v1268_v52 = vpop.permute.xlu0 %1267 }
 0x305   :  { %1530 = vmatprep.mubr.msk.bf16.mxu0 %vm599_vm4, %v1672_v23 }
 0x308   :  { %v2247_v53 = vpop.f32.mrb[60].mxu1 }
 0x309   :  { %v814_v54 = vpop.f32.mrb[61].mxu1 }
 0x30a   :  { %v2249_v55 = vpop.f32.mrb[62].mxu1 }
 0x30b   :  { %v817_v56 = vpop.f32.mrb[63].mxu1 }
 0x30c   :  { %1178 = vmatmul.mubr.bf16.gmra.mrb[60].mxu0 %v1674_v24 }
 0x30d   :  { %1531 = vmatprep.mubr.msk.bf16.mxu0 %vm599_vm4, %v1678_v25 }
 0x310   :  { %v2251_v57 = vpop.f32.mrb[64].mxu1 }
 0x311   :  { %v822_v58 = vpop.f32.mrb[65].mxu1 }
 0x312   :  { %v2253_v59 = vpop.f32.mrb[66].mxu1 }
 0x313   :  { %v825_v60 = vpop.f32.mrb[67].mxu1 }
 0x314   :  { %1186 = vmatmul.mubr.bf16.gmra.mrb[64].mxu0 %v1680_v27 }
 0x315   :  { %1532 = vmatprep.mubr.msk.bf16.mxu0 %vm599_vm4, %v1523_v28 }
 0x31c   :  { %1194 = vmatmul.mubr.bf16.gmra.mrb[68].mxu0 %v1522_v29 }
 0x31d   :  { %1535 = vmatprep.mubr.msk.bf16.mxu0 %vm599_vm4, %v1534_v62 }
 0x3af   :  { %v1131_v63 = vpop.f32.mrb[36].mxu0 }
 0x3b0   :  { %v1201_v2 = vadd.f32 %v1131_v63, %v2172_v5  ;;  %v1133_v3 = vpop.f32.mrb[37].mxu0  ;;  %v1253_v5 = vpop.permute.xlu1 %1252 }
 0x3b1   :  { %v1134_v11 = vpop.f32.mrb[38].mxu0 }
 0x3b2   :  { %v1320_v7 = vadd.f32 %v1238_v4, %v1201_v2  ;;  %v1202_v8 = vadd.f32 %v1134_v11, %v764_v30  ;;  %v1136_v9 = vpop.f32.mrb[39].mxu0 }
 0x3b4   :  { %v1321_v12 = vadd.f32 %v1243_v10, %v1202_v8  ;;  %v1337_v13 = vmax.f32 %v1320_v7, 0.0  ;;  %v1263_v38 = vpop.permute.xlu1 %1262 }
 0x3b6   :  { %v1338_v14 = vmax.f32 %v1321_v12, 0.0 }
 0x3b7   :  { %v1139_v15 = vpop.f32.mrb[40].mxu0 }
 0x3b8   :  { %v1355_v16 = vpack.c.bf16 %v1338_v14, %v1337_v13  ;;  %v1203_v17 = vadd.f32 %v1139_v15, %v767_v32  ;;  %v1141_v18 = vpop.f32.mrb[41].mxu0 }
 0x3b9   :  { %v1142_v20 = vpop.f32.mrb[42].mxu0 }
 0x3ba   :  { %v1322_v21 = vadd.f32 %v1248_v19, %v1203_v17  ;;  %v1204_v22 = vadd.f32 %v1142_v20, %v772_v34  ;;  %v1144_v23 = vpop.f32.mrb[43].mxu0  ;;  %1383 = vmatpush1.bf16.msra.mxu0 %v1355_v16 }
 0x3bb   :  { %1384 = vmatprep.subr.bf16.mxu0 %v1709_v1 }
 0x3bc   :  { %v1323_v24 = vadd.f32 %v1253_v5, %v1204_v22  ;;  %v1339_v25 = vmax.f32 %v1322_v21, 0.0 }
 0x3be   :  { %v1340_v26 = vmax.f32 %v1323_v24, 0.0 }
 0x3bf   :  { %v1147_v27 = vpop.f32.mrb[44].mxu0 }
 0x3c0   :  { %v1356_v28 = vpack.c.bf16 %v1340_v26, %v1339_v25  ;;  %v1205_v29 = vadd.f32 %v1147_v27, %v775_v36  ;;  %v1149_v30 = vpop.f32.mrb[45].mxu0 }
 0x3c1   :  { %v1150_v33 = vpop.f32.mrb[46].mxu0 }
 0x3c2   :  { %v1324_v32 = vadd.f32 %v1258_v31, %v1205_v29  ;;  %v1206_v35 = vadd.f32 %v1150_v33, %v780_v37  ;;  %v1152_v6 = vpop.f32.mrb[47].mxu0  ;;  %1385 = vmatpush1.bf16.msra.mxu0 %v1356_v28  ;;  %v1273_v37 = vpop.permute.xlu1 %1272 }
 0x3c3   :  { %1386 = vmatprep.subr.bf16.mxu0 %v1709_v1 }
 0x3c4   :  { %v1325_v34 = vadd.f32 %v1263_v38, %v1206_v35  ;;  %v1341_v40 = vmax.f32 %v1324_v32, 0.0 }
 0x3c6   :  { %v1342_v42 = vmax.f32 %v1325_v34, 0.0 }
 0x3c7   :  { %v1155_v44 = vpop.f32.mrb[48].mxu0 }
 0x3c8   :  { %v1357_v46 = vpack.c.bf16 %v1342_v42, %v1341_v40  ;;  %v1207_v48 = vadd.f32 %v1155_v44, %v2233_v39  ;;  %v1157_v50 = vpop.f32.mrb[49].mxu0  ;;  %v1278_v39 = vpop.permute.xlu0 %1277 }
 0x3c9   :  { %v1158_v36 = vpop.f32.mrb[50].mxu0 }
 0x3ca   :  { %v1326_v54 = vadd.f32 %v1268_v52, %v1207_v48  ;;  %v1208_v56 = vadd.f32 %v1158_v36, %v2235_v41  ;;  %v1160_v58 = vpop.f32.mrb[51].mxu0  ;;  %1387 = vmatpush1.bf16.msra.mxu0 %v1357_v46  ;;  %v1283_v41 = vpop.permute.xlu1 %1282 }
 0x3cb   :  { %1388 = vmatprep.subr.bf16.mxu0 %v1709_v1 }
 0x3cc   :  { %v1327_v60 = vadd.f32 %v1273_v37, %v1208_v56  ;;  %v1343_v62 = vmax.f32 %v1326_v54, 0.0 }
 0x3ce   :  { %v1344_v63 = vmax.f32 %v1327_v60, 0.0 }
 0x3cf   :  { %v1163_v2 = vpop.f32.mrb[52].mxu0 }
 0x3d0   :  { %v1358_v3 = vpack.c.bf16 %v1344_v63, %v1343_v62  ;;  %v1209_v4 = vadd.f32 %v1163_v2, %v2237_v43  ;;  %v1165_v11 = vpop.f32.mrb[53].mxu0  ;;  %v1288_v43 = vpop.permute.xlu0 %1287 }
 0x3d1   :  { %v1166_v7 = vpop.f32.mrb[54].mxu0  ;;  %v1533_v11 = vcombine.low %v2258_v61, %v2258_v61 }
 0x3d2   :  { %v1328_v8 = vadd.f32 %v1278_v39, %v1209_v4  ;;  %v1210_v9 = vadd.f32 %v1166_v7, %v2239_v45  ;;  %v1168_v10 = vpop.f32.mrb[55].mxu0  ;;  %1389 = vmatpush1.bf16.msra.mxu0 %v1358_v3  ;;  %v1293_v45 = vpop.permute.xlu1 %1292 }
 0x3d3   :  { %1390 = vmatprep.subr.bf16.mxu0 %v1709_v1 }
 0x3d4   :  { %v1329_v12 = vadd.f32 %v1283_v41, %v1210_v9  ;;  %v1345_v13 = vmax.f32 %v1328_v8, 0.0 }
 0x3d6   :  { %v1346_v14 = vmax.f32 %v1329_v12, 0.0 }
 0x3d7   :  { %v1171_v15 = vpop.f32.mrb[56].mxu0 }
 0x3d8   :  { %v1359_v16 = vpack.c.bf16 %v1346_v14, %v1345_v13  ;;  %v1211_v17 = vadd.f32 %v1171_v15, %v2241_v47  ;;  %v1173_v18 = vpop.f32.mrb[57].mxu0  ;;  %v1298_v47 = vpop.permute.xlu0 %1297 }
 0x3d9   :  { %v1174_v19 = vpop.f32.mrb[58].mxu0 }
 0x3da   :  { %v1330_v20 = vadd.f32 %v1288_v43, %v1211_v17  ;;  %v1212_v21 = vadd.f32 %v1174_v19, %v2243_v49  ;;  %v1176_v22 = vpop.f32.mrb[59].mxu0  ;;  %1391 = vmatpush1.bf16.msra.mxu0 %v1359_v16  ;;  %v1303_v49 = vpop.permute.xlu1 %1302 }
 0x3db   :  { %1392 = vmatprep.subr.bf16.mxu0 %v1709_v1 }
 0x3dc   :  { %v1331_v23 = vadd.f32 %v1293_v45, %v1212_v21  ;;  %v1347_v5 = vmax.f32 %v1330_v20, 0.0 }
 0x3de   :  { %v1348_v24 = vmax.f32 %v1331_v23, 0.0 }
 0x3df   :  { %v1179_v25 = vpop.f32.mrb[60].mxu0 }
 0x3e0   :  { %v1360_v26 = vpack.c.bf16 %v1348_v24, %v1347_v5  ;;  %v1213_v27 = vadd.f32 %v1179_v25, %v2245_v51  ;;  %v1181_v28 = vpop.f32.mrb[61].mxu0  ;;  %v1308_v51 = vpop.permute.xlu0 %1307 }
 0x3e1   :  { %v1182_v29 = vpop.f32.mrb[62].mxu0 }
 0x3e2   :  { %v1332_v30 = vadd.f32 %v1298_v47, %v1213_v27  ;;  %v1214_v31 = vadd.f32 %v1182_v29, %v2247_v53  ;;  %v1184_v33 = vpop.f32.mrb[63].mxu0  ;;  %1393 = vmatpush1.bf16.msra.mxu0 %v1360_v26  ;;  %v1313_v53 = vpop.permute.xlu1 %1312 }
 0x3e3   :  { %1394 = vmatprep.subr.bf16.mxu0 %v1709_v1 }
 0x3e4   :  { %v1333_v32 = vadd.f32 %v1303_v49, %v1214_v31  ;;  %v1349_v35 = vmax.f32 %v1332_v30, 0.0 }
 0x3e6   :  { %v1350_v6 = vmax.f32 %v1333_v32, 0.0 }
 0x3e7   :  { %v1187_v38 = vpop.f32.mrb[64].mxu0 }
 0x3e8   :  { %v1361_v34 = vpack.c.bf16 %v1350_v6, %v1349_v35  ;;  %v1215_v40 = vadd.f32 %v1187_v38, %v2249_v55  ;;  %v1189_v42 = vpop.f32.mrb[65].mxu0  ;;  %v1318_v55 = vpop.permute.xlu0 %1317 }
 0x3e9   :  { %v1190_v44 = vpop.f32.mrb[66].mxu0 }
 0x3ea   :  { %v1334_v46 = vadd.f32 %v1308_v51, %v1215_v40  ;;  %v1216_v48 = vadd.f32 %v1190_v44, %v2251_v57  ;;  %v1192_v50 = vpop.f32.mrb[67].mxu0  ;;  %1395 = vmatpush1.bf16.msra.mxu0 %v1361_v34 }
 0x3eb   :  { %1396 = vmatprep.subr.bf16.mxu0 %v1709_v1 }
 0x3ec   :  { %v1335_v52 = vadd.f32 %v1313_v53, %v1216_v48  ;;  %v1351_v36 = vmax.f32 %v1334_v46, 0.0 }
 0x3ee   :  { %v1352_v54 = vmax.f32 %v1335_v52, 0.0 }
 0x3ef   :  { %v1195_v56 = vpop.f32.mrb[68].mxu0 }
 0x3f0   :  { %v1362_v58 = vpack.c.bf16 %v1352_v54, %v1351_v36  ;;  %v1217_v37 = vadd.f32 %v1195_v56, %v2253_v59  ;;  %v1197_v60 = vpop.f32.mrb[69].mxu0  ;;  %v1368_v59 = vpop.permute.xlu1 %1367 }
 0x3f1   :  { %v1198_v62 = vpop.f32.mrb[70].mxu0 }
 0x3f2   :  { %v1336_v63 = vadd.f32 %v1318_v55, %v1217_v37  ;;  %v1199_v2 = vpop.f32.mrb[71].mxu0  ;;  %1397 = vmatpush1.bf16.msra.mxu0 %v1362_v58 }
 0x3f3   :  { %1398 = vmatprep.subr.bf16.mxu0 %v1709_v1 }
 0x3f4   :  { %v1353_v57 = vmax.f32 %v1336_v63, 0.0 }
 0x3f6   :  { %v1363_v3 = vpack.c.bf16 %v1353_v57, %v1353_v57 }
 0x3f8   :  { %v1380_v4 = vand.u32 %v1363_v3, %v2043_v0 }
 0x3fa   :  { %1399 = vmatpush1.bf16.msra.mxu0 %v1380_v4 }
 0x3fd   :  { %1415 = vmatmul.mubr.bf16.vlgmr.msra.gmra.mrb[72].mxu0 %v1533_v11 }
 0x4d0   :  { %v1416_v39 = vpop.f32.mrb[72].mxu0 }
 0x4d1   :  { %v1417_v7 = vadd.f32 %v1416_v39, %v1368_v59  ;;  %v1418_v8 = vpop.f32.mrb[73].mxu0 }
 0x4d2   :  { %v1419_v9 = vpop.f32.mrb[74].mxu0 }
 0x4d3   :  { %1422 = vst [vmem:[#allocation2] sm:$0xff] %v1417_v7  ;;  %v1420_v10 = vpop.f32.mrb[75].mxu0 }
 0x4d4   :  { %1696 = shalt.err (!%p1693_p4)
}
 0x4d5   :  { %s1697_s23 = scalar_lea.hbm %s2307_s9, 128 }
 0x4d6   :  { %p1698_p5 = scmp.ne.s32.totalorder %s2307_s9, %s1697_s23  ;;  %p1701_p6 = scmp.lt.u32.totalorder %s1697_s23, %s2307_s9 }
 0x4d8   :  { %p1703_p7 = pnand %p1701_p6, %p1698_p5 }
 0x4da   :  { %1706 = shalt.err (!%p1703_p7)
}
 0x4db   :  { %1432 = dma.vmem_to_hbm [thread:$0]  %s1430_s19, 128, %s2307_s9, [#allocation3]  }
 0x4dc   :  { %1707 = dma.done.wait [#allocation3], 128  }
 0x4dd   :  { %1708 = vsyncadd [#allocation3], 4294967168 }
 0x4de   :  { %1436 = vsyncpa [#allocation3], 1 }

</bundles_post_ra>
